<compile_context>
chip_gen: v7x
topology: tpu7x:2x2x1
jax: 0.10.0
libtpu: 0.0.40
codegen_flags: <defaults>
</compile_context>

<pallas_src>
import math

import jax
import jax.numpy as jnp
from jax.experimental import pallas as pl
from jax.experimental.pallas import tpu as pltpu


def encoder_mlp_kernel(x_ref, w1_ref, b1_ref, w2_ref, b2_ref, wo_ref, bo_ref,
                       o_ref):
    """Fused MLP: (Linear+ReLU) x2 + Linear.  bf16 MXU inputs, f32 accum/epilogue."""
    x = x_ref[...]                                            # (tm, D) bf16
    # linear1 + bn1(Identity) + ReLU
    h = jnp.dot(x, w1_ref[...], preferred_element_type=jnp.float32) + b1_ref[...]
    h = jnp.maximum(h, 0.0)
    # middle: Linear -> Identity -> ReLU
    h = jnp.dot(h.astype(jnp.bfloat16), w2_ref[...],
                preferred_element_type=jnp.float32) + b2_ref[...]
    h = jnp.maximum(h, 0.0)
    # output_layer
    o = jnp.dot(h.astype(jnp.bfloat16), wo_ref[...],
                preferred_element_type=jnp.float32) + bo_ref[...]
    o_ref[...] = o.astype(o_ref.dtype)


def _choose_tm(batch):
    """Largest power-of-two tile <=1024 that keeps >=2 grid steps (v7x megacore),
    with a floor of 8 rows (sublane granularity)."""
    tm = 1024
    while tm > 8 and pl.cdiv(batch, tm) < 2:
        tm //= 2
    return tm


def encoder_forward(x, params, *, tm=None):
    """x: (B, input_dim) f32.  params: [(W1,b1),(W2,b2),(Wo,bo)] with W as (in,out)."""
    (w1, b1), (w2, b2), (wo, bo) = params
    B, D = x.shape
    H0, H1, E = w1.shape[1], w2.shape[1], wo.shape[1]
    out_dtype = x.dtype

    if tm is None:
        tm = _choose_tm(B)
    grid = pl.cdiv(B, tm)
    Bp = grid * tm
    if Bp != B:                       # pad ragged batch; pad rows sliced off below
        x = jnp.pad(x, ((0, Bp - B), (0, 0)))

    # MXU operands in bf16, biases / epilogue in f32.
    xb = x.astype(jnp.bfloat16)
    w1b = w1.astype(jnp.bfloat16)
    w2b = w2.astype(jnp.bfloat16)
    wob = wo.astype(jnp.bfloat16)
    b1f = b1.astype(jnp.float32)
    b2f = b2.astype(jnp.float32)
    bof = bo.astype(jnp.float32)

    itemsize_out = jnp.dtype(out_dtype).itemsize
    flops = 2 * Bp * (D * H0 + H0 * H1 + H1 * E)
    bytes_accessed = (
        Bp * D * 2                                  # x (bf16)
        + Bp * E * itemsize_out                     # output
        + (D * H0 + H0 * H1 + H1 * E) * 2           # weights (bf16)
        + (H0 + H1 + E) * 4                         # biases (f32)
    )
    cost = pl.CostEstimate(flops=flops, transcendentals=0,
                           bytes_accessed=bytes_accessed)

    full = lambda i: (0, 0)  # weights / biases resident for every batch tile

    out = pl.pallas_call(
        encoder_mlp_kernel,
        out_shape=jax.ShapeDtypeStruct((Bp, E), out_dtype),
        grid_spec=pltpu.PrefetchScalarGridSpec(
            num_scalar_prefetch=0,
            grid=(grid,),                                   # tile over batch only
            in_specs=[
                pl.BlockSpec((tm, D), lambda i: (i, 0)),    # x tile
                pl.BlockSpec((D, H0), full),                # W1
                pl.BlockSpec((1, H0), full),                # b1
                pl.BlockSpec((H0, H1), full),               # W2
                pl.BlockSpec((1, H1), full),                # b2
                pl.BlockSpec((H1, E), full),                # Wo
                pl.BlockSpec((1, E), full),                 # bo
            ],
            out_specs=pl.BlockSpec((tm, E), lambda i: (i, 0)),
        ),
        compiler_params=pltpu.CompilerParams(
            dimension_semantics=("parallel",),
            vmem_limit_bytes=32 * 1024 * 1024),
        cost_estimate=cost,
    )(xb, w1b, b1f, w2b, b2f, wob, bof)

    return out[:B] if Bp != B else out


def init_linear(key, fan_in, fan_out):
    """PyTorch-style init: U(-1/sqrt(fan_in), 1/sqrt(fan_in)).

    Returns W already transposed to (in, out) and bias as a (1, out) row.
    """
    kw, kb = jax.random.split(key)
    bound = 1.0 / math.sqrt(fan_in)
    w = jax.random.uniform(kw, (fan_in, fan_out), jnp.float32, -bound, bound)
    b = jax.random.uniform(kb, (1, fan_out), jnp.float32, -bound, bound)
    return w, b


def encoder_reference(x, params):
    """Pure-JAX f32 reference of the PyTorch forward (same param layout)."""
    (w1, b1), (w2, b2), (wo, bo) = params
    h = jnp.maximum(x @ w1 + b1, 0.0)
    h = jnp.maximum(h @ w2 + b2, 0.0)
    return h @ wo + bo


if __name__ == "__main__":
    # Small but non-trivial batch: not a multiple of the tile (exercises the
    # padding path) and large enough to give a >=2-step parallel grid.
    B = 300
    input_dim = 32
    hidden_dim = [64, 64]
    encoding_dim = 16

    key = jax.random.PRNGKey(0)
    kx, k1, k2, k3 = jax.random.split(key, 4)

    x = jax.random.normal(kx, (B, input_dim), jnp.float32)
    params = [
        init_linear(k1, input_dim, hidden_dim[0]),      # linear1
        init_linear(k2, hidden_dim[0], hidden_dim[1]),  # middle[0].Linear
        init_linear(k3, hidden_dim[1], encoding_dim),   # output_layer
    ]

    out = encoder_forward(x, params)
    out = jax.block_until_ready(out)

    ref = encoder_reference(x, params)
    assert out.shape == (B, encoding_dim)
    # bf16 MXU inputs with f32 accumulation -> loosen tolerance vs the f32 ref.
    assert jnp.allclose(out, ref, atol=5e-2, rtol=5e-2), "mismatch vs reference"

    print("KERNEL_OK")
</pallas_src>

<mosaic_0001>
module attributes {stable_mosaic.version = 11 : i64} {
  func.func @encoder_mlp_kernel(%arg0: i32, %arg1: memref<256x32xbf16, #tpu.memory_space<vmem>>, %arg2: memref<32x64xbf16, #tpu.memory_space<vmem>>, %arg3: memref<1x64xf32, #tpu.memory_space<vmem>>, %arg4: memref<64x64xbf16, #tpu.memory_space<vmem>>, %arg5: memref<1x64xf32, #tpu.memory_space<vmem>>, %arg6: memref<64x16xbf16, #tpu.memory_space<vmem>>, %arg7: memref<1x16xf32, #tpu.memory_space<vmem>>, %arg8: memref<256x16xf32, #tpu.memory_space<vmem>>) attributes {dimension_semantics = [#tpu.dimension_semantics<parallel>], iteration_bounds = array<i64: 2>, scalar_prefetch = 0 : i64, scratch_operands = 0 : i64, tpu.core_type = #tpu.core_type<tc>, window_params = [{transform_indices = @transform_0, window_bounds = array<i64: 256, 32>}, {pipeline_mode = #tpu.pipeline_mode<synchronous>, transform_indices = @transform_1, window_bounds = array<i64: 32, 64>}, {pipeline_mode = #tpu.pipeline_mode<synchronous>, transform_indices = @transform_2, window_bounds = array<i64: 1, 64>}, {pipeline_mode = #tpu.pipeline_mode<synchronous>, transform_indices = @transform_3, window_bounds = array<i64: 64, 64>}, {pipeline_mode = #tpu.pipeline_mode<synchronous>, transform_indices = @transform_4, window_bounds = array<i64: 1, 64>}, {pipeline_mode = #tpu.pipeline_mode<synchronous>, transform_indices = @transform_5, window_bounds = array<i64: 64, 16>}, {pipeline_mode = #tpu.pipeline_mode<synchronous>, transform_indices = @transform_6, window_bounds = array<i64: 1, 16>}, {transform_indices = @transform_7, window_bounds = array<i64: 256, 16>}]} {
    %c0 = arith.constant 0 : index
    %c0_0 = arith.constant 0 : index
    %0 = vector.load %arg1[%c0, %c0_0] : memref<256x32xbf16, #tpu.memory_space<vmem>>, vector<256x32xbf16>
    %c0_1 = arith.constant 0 : index
    %c0_2 = arith.constant 0 : index
    %1 = vector.load %arg2[%c0_1, %c0_2] : memref<32x64xbf16, #tpu.memory_space<vmem>>, vector<32x64xbf16>
    %cst = arith.constant dense<0.000000e+00> : vector<256x64xf32>
    %2 = tpu.matmul %0, %1, %cst {dimension_numbers = #tpu.dot_dimension_numbers<[1], [0], [0], [1], [0, 0, 1, 1], [], []>} : vector<256x32xbf16>, vector<32x64xbf16>, vector<256x64xf32> -> vector<256x64xf32>
    %c0_3 = arith.constant 0 : index
    %c0_4 = arith.constant 0 : index
    %3 = vector.load %arg3[%c0_3, %c0_4] : memref<1x64xf32, #tpu.memory_space<vmem>>, vector<1x64xf32>
    %4 = vector.broadcast %3 : vector<1x64xf32> to vector<256x64xf32>
    %5 = arith.addf %2, %4 : vector<256x64xf32>
    %cst_5 = arith.constant 0.000000e+00 : f32
    %6 = vector.broadcast %cst_5 : f32 to vector<256x64xf32>
    %7 = arith.maximumf %5, %6 : vector<256x64xf32>
    %8 = arith.truncf %7 : vector<256x64xf32> to vector<256x64xbf16>
    %c0_6 = arith.constant 0 : index
    %c0_7 = arith.constant 0 : index
    %9 = vector.load %arg4[%c0_6, %c0_7] : memref<64x64xbf16, #tpu.memory_space<vmem>>, vector<64x64xbf16>
    %cst_8 = arith.constant dense<0.000000e+00> : vector<256x64xf32>
    %10 = tpu.matmul %8, %9, %cst_8 {dimension_numbers = #tpu.dot_dimension_numbers<[1], [0], [0], [1], [0, 0, 1, 1], [], []>} : vector<256x64xbf16>, vector<64x64xbf16>, vector<256x64xf32> -> vector<256x64xf32>
    %c0_9 = arith.constant 0 : index
    %c0_10 = arith.constant 0 : index
    %11 = vector.load %arg5[%c0_9, %c0_10] : memref<1x64xf32, #tpu.memory_space<vmem>>, vector<1x64xf32>
    %12 = vector.broadcast %11 : vector<1x64xf32> to vector<256x64xf32>
    %13 = arith.addf %10, %12 : vector<256x64xf32>
    %cst_11 = arith.constant 0.000000e+00 : f32
    %14 = vector.broadcast %cst_11 : f32 to vector<256x64xf32>
    %15 = arith.maximumf %13, %14 : vector<256x64xf32>
    %16 = arith.truncf %15 : vector<256x64xf32> to vector<256x64xbf16>
    %c0_12 = arith.constant 0 : index
    %c0_13 = arith.constant 0 : index
    %17 = vector.load %arg6[%c0_12, %c0_13] : memref<64x16xbf16, #tpu.memory_space<vmem>>, vector<64x16xbf16>
    %cst_14 = arith.constant dense<0.000000e+00> : vector<256x16xf32>
    %18 = tpu.matmul %16, %17, %cst_14 {dimension_numbers = #tpu.dot_dimension_numbers<[1], [0], [0], [1], [0, 0, 1, 1], [], []>} : vector<256x64xbf16>, vector<64x16xbf16>, vector<256x16xf32> -> vector<256x16xf32>
    %c0_15 = arith.constant 0 : index
    %c0_16 = arith.constant 0 : index
    %19 = vector.load %arg7[%c0_15, %c0_16] : memref<1x16xf32, #tpu.memory_space<vmem>>, vector<1x16xf32>
    %20 = vector.broadcast %19 : vector<1x16xf32> to vector<256x16xf32>
    %21 = arith.addf %18, %20 : vector<256x16xf32>
    %c0_17 = arith.constant 0 : index
    %c0_18 = arith.constant 0 : index
    %22 = vector.load %arg8[%c0_17, %c0_18] : memref<256x16xf32, #tpu.memory_space<vmem>>, vector<256x16xf32>
    tpu.vector_store %arg8[%c0_17, %c0_18], %21 {strides = array<i32>} : memref<256x16xf32, #tpu.memory_space<vmem>>, vector<256x16xf32>,
    return
  }
  func.func @transform_0(%arg0: i32) -> (i32, i32) {
    %c0_i32 = arith.constant 0 : i32
    %c0_i32_0 = arith.constant 0 : i32
    return %arg0, %c0_i32 : i32, i32
  }
  func.func @transform_1(%arg0: i32) -> (i32, i32) {
    %c0_i32 = arith.constant 0 : i32
    %c0_i32_0 = arith.constant 0 : i32
    %c0_i32_1 = arith.constant 0 : i32
    return %c0_i32, %c0_i32_0 : i32, i32
  }
  func.func @transform_2(%arg0: i32) -> (i32, i32) {
    %c0_i32 = arith.constant 0 : i32
    %c0_i32_0 = arith.constant 0 : i32
    %c0_i32_1 = arith.constant 0 : i32
    return %c0_i32, %c0_i32_0 : i32, i32
  }
  func.func @transform_3(%arg0: i32) -> (i32, i32) {
    %c0_i32 = arith.constant 0 : i32
    %c0_i32_0 = arith.constant 0 : i32
    %c0_i32_1 = arith.constant 0 : i32
    return %c0_i32, %c0_i32_0 : i32, i32
  }
  func.func @transform_4(%arg0: i32) -> (i32, i32) {
    %c0_i32 = arith.constant 0 : i32
    %c0_i32_0 = arith.constant 0 : i32
    %c0_i32_1 = arith.constant 0 : i32
    return %c0_i32, %c0_i32_0 : i32, i32
  }
  func.func @transform_5(%arg0: i32) -> (i32, i32) {
    %c0_i32 = arith.constant 0 : i32
    %c0_i32_0 = arith.constant 0 : i32
    %c0_i32_1 = arith.constant 0 : i32
    return %c0_i32, %c0_i32_0 : i32, i32
  }
  func.func @transform_6(%arg0: i32) -> (i32, i32) {
    %c0_i32 = arith.constant 0 : i32
    %c0_i32_0 = arith.constant 0 : i32
    %c0_i32_1 = arith.constant 0 : i32
    return %c0_i32, %c0_i32_0 : i32, i32
  }
  func.func @transform_7(%arg0: i32) -> (i32, i32) {
    %c0_i32 = arith.constant 0 : i32
    %c0_i32_0 = arith.constant 0 : i32
    return %arg0, %c0_i32 : i32, i32
  }
}

</mosaic_0001>

<bundles_post_ra>
// kernel: tpu_custom_call.1
= control target key start
LH: loop header
LB: loop body
LE: loop exit
PB: predicated region body
PF: predicated region fallthrough
CT: control target
= control target key end

     0   :  { %s1658_s24 = smov 0   ;;  %s1958_s0 = inlined_call_operand.vmem [shape: bf16[512,32], index: 0, kind: input, shape index: {}]   ;;  %s1959_s1 = inlined_call_operand.vmem [shape: bf16[32,64], index: 1, kind: input, shape index: {}]   ;;  %s1960_s2 = inlined_call_operand.vmem [shape: f32[1,64], index: 2, kind: input, shape index: {}]   ;;  %s1961_s3 = inlined_call_operand.vmem [shape: bf16[64,64], index: 3, kind: input, shape index: {}]   ;;  %s1962_s4 = inlined_call_operand.vmem [shape: f32[1,64], index: 4, kind: input, shape index: {}]   ;;  %s1963_s5 = inlined_call_operand.vmem [shape: bf16[64,16], index: 5, kind: input, shape index: {}]   ;;  %s1964_s6 = inlined_call_operand.vmem [shape: f32[1,16], index: 6, kind: input, shape index: {}]   ;;  %s1965_s7 = inlined_call_operand.vmem [shape: f32[512,16], index: 7, kind: output, shape index: {}]  }
   0x1 LB: > { %s1310_s25 = sadd.s32 4294967295, %s1616_s24   ;;  %p1314_p0 = scmp.ge.s32.totalorder %s1616_s24, 1  ;;  %s1616_s24 = sphi %s1658_s24, %s17_s24  }
   0x2   : > { %p238_p1 = scmp.lt.s32.totalorder %s1616_s24, 3 }
   0x4   : > { %p239_p2 = pnand %p1314_p0, %p238_p1 }
   0x5   : > { %v1584_v0 = vld [vmem:[%s1959_s1] sm:$0xff] (!%p239_p2)   ;;  %s1315_s28 = sshll.u32 (!%p239_p2), %s1310_s25, 5  ;;  %v1585_v1 = vld [vmem:[%s1959_s1 + $0x8] sm:$0xff] (!%p239_p2)   ;;  %vm418_vm0 = vcmask (!%p239_p2), 261120   ;;  %v1604_v12 = vld [vmem:[%s1961_s3 + $0x10] sm:$0xff] (!%p239_p2)   ;;  %vm715_vm1 = vcmask (!%p239_p2), 523264  }
   0x6   : > { %242 = sbr.rel (%p239_p2) target bundleno = 736 (0x2e0), region = 48  ;;  %p271_p3 = scmp.lt.s32.totalorder (!%p239_p2), %s1315_s28, 63  ;;  %1456 = vmatprep.subr.bf16.mxu0 (!%p239_p2), %v1584_v0  ;;  %1572 = vmatprep.subr.bf16.mxu1 (!%p239_p2), %v1584_v0  ;;  %v1602_v2 = vld [vmem:[%s1961_s3] sm:$0xff] (!%p239_p2)   ;;  %v1603_v9 = vld [vmem:[%s1961_s3 + $0x8] sm:$0xff] (!%p239_p2)   ;;  %v1605_v21 = vld [vmem:[%s1961_s3 + $0x18] sm:$0xff] (!%p239_p2)   ;;  %vm1221_vm2 = vcmask (!%p239_p2), 130048  }
   0x7   : > { %1457 = vmatpush3.bf16.msra.mxu0 (!%p239_p2), %v1584_v0  ;;  %1574 = vmatpush3.bf16.msra.mxu1 (!%p239_p2), %v1584_v0  ;;  %v1606_v22 = vld [vmem:[%s1963_s5] sm:$0xff] (!%p239_p2)   ;;  %v1607_v23 = vld [vmem:[%s1963_s5 + $0x8] sm:$0xff] (!%p239_p2)   ;;  %v1608_v24 = vld [vmem:[%s1963_s5 + $0x10] sm:$0xff] (!%p239_p2)  }
   0x8   : > { %1458 = vmatprep.subr.bf16.mxu0 (!%p239_p2), %v1585_v1  ;;  %1573 = vmatprep.subr.bf16.mxu1 (!%p239_p2), %v1585_v1  ;;  %v1736_v25 = vld [vmem:[%s1960_s2] ss:$0 sm:$0xff] (!%p239_p2) }
   0xb   : > { %1459 = vmatpush3.bf16.msra.mxu0 (!%p239_p2), %v1585_v1  ;;  %1575 = vmatpush3.bf16.msra.mxu1 (!%p239_p2), %v1585_v1 }
   0xc   : > { %1492 = vmatprep.subr.bf16.mxu1 (!%p239_p2), %v1602_v2  ;;  %1532 = vmatprep.subr.bf16.mxu0 (!%p239_p2), %v1606_v22 }
   0xd   : > { %s1967_s28 = smov (!%p271_p3, %s1315_s28), 63 }
   0xe   : > { %s1316_s10 = sshll.u32 %s1967_s28, 2  ;;  %s1318_s11 = sshll.u32 %s1967_s28, 3 }
   0xf   : > { %s1681_s13 = scalar_lea.vmem %s1958_s0, %s1316_s10  ;;  %s1857_s16 = scalar_lea.vmem %s1965_s7, %s1318_s11 }
  0x10   : > { %v1586_v3 = vld [vmem:[%s1681_s13] sm:$0xff]   ;;  %v1587_v4 = vld [vmem:[%s1681_s13 + $0x8] sm:$0xff]   ;;  %v1588_v5 = vld [vmem:[%s1681_s13 + $0x10] sm:$0xff]  }
  0x11   : > { %1460 = vmatprep.mubr.msk.bf16.mxu0 %vm418_vm0, %v1586_v3  ;;  %v1589_v6 = vld [vmem:[%s1681_s13 + $0x18] sm:$0xff]   ;;  %v1590_v7 = vld [vmem:[%s1681_s13 + $0x20] sm:$0xff]   ;;  %v1595_v10 = vld [vmem:[%s1681_s13 + $0x48] sm:$0xff]  }
  0x12   : > { %1461 = vmatmul.mubr.msk.bf16.vlgmr.msra.gmra.mrb[0].mxu0 %vm418_vm0, %v1587_v4  ;;  %v1594_v8 = vld [vmem:[%s1681_s13 + $0x40] sm:$0xff]   ;;  %v1596_v11 = vld [vmem:[%s1681_s13 + $0x50] sm:$0xff]   ;;  %v1591_v13 = vld [vmem:[%s1681_s13 + $0x28] sm:$0xff]  }
  0x13   : > { %1464 = vmatprep.mubr.msk.bf16.mxu0 %vm418_vm0, %v1588_v5  ;;  %1476 = vmatprep.mubr.msk.bf16.mxu1 %vm418_vm0, %v1594_v8  ;;  %v1592_v14 = vld [vmem:[%s1681_s13 + $0x30] sm:$0xff]   ;;  %v1597_v15 = vld [vmem:[%s1681_s13 + $0x58] sm:$0xff]   ;;  %v1598_v16 = vld [vmem:[%s1681_s13 + $0x60] sm:$0xff]  }
  0x14   : > { %1477 = vmatmul.mubr.msk.bf16.vlgmr.msra.gmra.mrb[0].mxu1 %vm418_vm0, %v1595_v10  ;;  %v1593_v17 = vld [vmem:[%s1681_s13 + $0x38] sm:$0xff]   ;;  %v1599_v18 = vld [vmem:[%s1681_s13 + $0x68] sm:$0xff]   ;;  %v1600_v19 = vld [vmem:[%s1681_s13 + $0x70] sm:$0xff]   ;;  %1533 = vmatpush3.bf16.msra.mxu0 %v1606_v22 }
  0x15   : > { %1480 = vmatprep.mubr.msk.bf16.mxu1 %vm418_vm0, %v1596_v11  ;;  %1493 = vmatpush3.bf16.msra.mxu1 %v1602_v2  ;;  %v1601_v20 = vld [vmem:[%s1681_s13 + $0x78] sm:$0xff]  }
  0x16   : > { %1494 = vmatprep.subr.bf16.mxu1 %v1603_v9  ;;  %1534 = vmatprep.subr.bf16.mxu0 %v1607_v23 }
  0x18   : > { %1535 = vmatpush3.bf16.msra.mxu0 %v1607_v23 }
  0x19   : > { %1495 = vmatpush3.bf16.msra.mxu1 %v1603_v9  ;;  %1536 = vmatprep.subr.bf16.mxu0 %v1608_v24 }
  0x1a   : > { %1465 = vmatmul.mubr.msk.bf16.gmra.mrb[4].mxu0 %vm418_vm0, %v1589_v6  ;;  %1496 = vmatprep.subr.bf16.mxu1 %v1604_v12 }
  0x1b   : > { %1468 = vmatprep.mubr.msk.bf16.mxu0 %vm418_vm0, %v1590_v7 }
  0x1c   : > { %1481 = vmatmul.mubr.msk.bf16.gmra.mrb[4].mxu1 %vm418_vm0, %v1597_v15  ;;  %1537 = vmatpush3.bf16.msra.mxu0 %v1608_v24 }
  0x1d   : > { %1484 = vmatprep.mubr.msk.bf16.mxu1 %vm418_vm0, %v1598_v16  ;;  %1497 = vmatpush3.bf16.msra.mxu1 %v1604_v12 }
  0x1e   : > { %1498 = vmatprep.subr.bf16.mxu1 %v1605_v21 }
  0x21   : > { %1499 = vmatpush3.bf16.msra.mxu1 %v1605_v21 }
  0x22   : > { %1469 = vmatmul.mubr.msk.bf16.gmra.mrb[8].mxu0 %vm418_vm0, %v1591_v13 }
  0x23   : > { %1472 = vmatprep.mubr.msk.bf16.mxu0 %vm418_vm0, %v1592_v14 }
  0x24   : > { %1485 = vmatmul.mubr.msk.bf16.gmra.mrb[8].mxu1 %vm418_vm0, %v1599_v18 }
  0x25   : > { %1488 = vmatprep.mubr.msk.bf16.mxu1 %vm418_vm0, %v1600_v19 }
  0x2a   : > { %1473 = vmatmul.mubr.msk.bf16.gmra.mrb[12].mxu0 %vm418_vm0, %v1593_v17 }
  0x2c   : > { %1489 = vmatmul.mubr.msk.bf16.gmra.mrb[12].mxu1 %vm418_vm0, %v1601_v20 }
  0xe5   : > { %v1462_v26 = vpop.f32.mrb[0].mxu0 }
  0xe6   : > { %v510_v27 = vadd.f32 %v1462_v26, %v1736_v25  ;;  %v501_v28 = vpop.f32.mrb[1].mxu0 }
  0xe7   : > { %v502_v29 = vadd.f32 %v1736_v25, %v501_v28  ;;  %v1463_v30 = vpop.f32.mrb[2].mxu0  ;;  %v1478_v41 = vpop.f32.mrb[0].mxu1 }
  0xe8   : > { %v513_v31 = vadd.f32 %v1463_v30, %v1736_v25  ;;  %v504_v32 = vpop.f32.mrb[3].mxu0  ;;  %v630_v34 = vmax.f32 %v510_v27, 0.0  ;;  %v574_v44 = vadd.f32 %v1478_v41, %v1736_v25  ;;  %v565_v45 = vpop.f32.mrb[1].mxu1 }
  0xe9   : > { %v505_v33 = vadd.f32 %v1736_v25, %v504_v32  ;;  %v628_v36 = vmax.f32 %v502_v29, 0.0  ;;  %v566_v48 = vadd.f32 %v1736_v25, %v565_v45  ;;  %v1479_v49 = vpop.f32.mrb[2].mxu1 }
  0xea   : > { %v631_v35 = vmax.f32 %v513_v31, 0.0  ;;  %v646_v52 = vmax.f32 %v574_v44, 0.0  ;;  %v577_v53 = vadd.f32 %v1479_v49, %v1736_v25  ;;  %v568_v54 = vpop.f32.mrb[3].mxu1 }
  0xeb   : > { %v629_v37 = vmax.f32 %v505_v33, 0.0  ;;  %v644_v56 = vmax.f32 %v566_v48, 0.0  ;;  %v569_v57 = vadd.f32 %v1736_v25, %v568_v54 }
  0xec   : > { %v661_v38 = vpack.c.bf16 %v631_v35, %v630_v34  ;;  %v647_v60 = vmax.f32 %v577_v53, 0.0 }
  0xed   : > { %v660_v39 = vpack.c.bf16 %v629_v37, %v628_v36  ;;  %v1466_v40 = vpop.f32.mrb[4].mxu0  ;;  %v645_v63 = vmax.f32 %v569_v57, 0.0 }
  0xee   : > { %v526_v42 = vadd.f32 %v1466_v40, %v1736_v25  ;;  %v517_v43 = vpop.f32.mrb[5].mxu0  ;;  %v1752_v1 = vpack.c.bf16 %v647_v60, %v646_v52 }
  0xef   : > { %v518_v46 = vadd.f32 %v1736_v25, %v517_v43  ;;  %v1467_v47 = vpop.f32.mrb[6].mxu0  ;;  %1500 = vmatprep.mubr.msk.bf16.mxu1 %vm715_vm1, %v660_v39  ;;  %v1754_v4 = vpack.c.bf16 %v645_v63, %v644_v56  ;;  %v1482_v5 = vpop.f32.mrb[4].mxu1 }
  0xf0   : > { %v529_v50 = vadd.f32 %v1467_v47, %v1736_v25  ;;  %v520_v51 = vpop.f32.mrb[7].mxu0  ;;  %1501 = vmatmul.mubr.msk.bf16.vlgmr.msra.gmra.mrb[16].mxu1 %vm715_vm1, %v661_v38  ;;  %v634_v58 = vmax.f32 %v526_v42, 0.0  ;;  %v590_v8 = vadd.f32 %v1482_v5, %v1736_v25  ;;  %v581_v9 = vpop.f32.mrb[5].mxu1 }
  0xf1   : > { %v521_v55 = vadd.f32 %v1736_v25, %v520_v51  ;;  %v632_v61 = vmax.f32 %v518_v46, 0.0  ;;  %v582_v12 = vadd.f32 %v1736_v25, %v581_v9  ;;  %v1483_v13 = vpop.f32.mrb[6].mxu1 }
  0xf2   : > { %v635_v59 = vmax.f32 %v529_v50, 0.0  ;;  %v650_v16 = vmax.f32 %v590_v8, 0.0  ;;  %v593_v17 = vadd.f32 %v1483_v13, %v1736_v25  ;;  %v584_v18 = vpop.f32.mrb[7].mxu1 }
  0xf3   : > { %v633_v62 = vmax.f32 %v521_v55, 0.0  ;;  %v648_v20 = vmax.f32 %v582_v12, 0.0  ;;  %v585_v21 = vadd.f32 %v1736_v25, %v584_v18 }
  0xf4   : > { %v663_v0 = vpack.c.bf16 %v635_v59, %v634_v58  ;;  %v651_v24 = vmax.f32 %v593_v17, 0.0 }
  0xf5   : > { %v662_v2 = vpack.c.bf16 %v633_v62, %v632_v61  ;;  %v1470_v3 = vpop.f32.mrb[8].mxu0  ;;  %v649_v28 = vmax.f32 %v585_v21, 0.0 }
  0xf6   : > { %v542_v6 = vadd.f32 %v1470_v3, %v1736_v25  ;;  %v533_v7 = vpop.f32.mrb[9].mxu0  ;;  %v671_v30 = vpack.c.bf16 %v651_v24, %v650_v16 }
  0xf7   : > { %v534_v10 = vadd.f32 %v1736_v25, %v533_v7  ;;  %v1471_v11 = vpop.f32.mrb[10].mxu0  ;;  %1504 = vmatprep.mubr.msk.bf16.mxu1 %vm715_vm1, %v662_v2  ;;  %v670_v33 = vpack.c.bf16 %v649_v28, %v648_v20  ;;  %v1486_v34 = vpop.f32.mrb[8].mxu1 }
  0xf8   : > { %v545_v14 = vadd.f32 %v1471_v11, %v1736_v25  ;;  %v536_v15 = vpop.f32.mrb[11].mxu0  ;;  %1505 = vmatmul.mubr.msk.bf16.gmra.mrb[20].mxu1 %vm715_vm1, %v663_v0  ;;  %v638_v22 = vmax.f32 %v542_v6, 0.0  ;;  %v606_v37 = vadd.f32 %v1486_v34, %v1736_v25  ;;  %v597_v38 = vpop.f32.mrb[9].mxu1 }
  0xf9   : > { %v537_v19 = vadd.f32 %v1736_v25, %v536_v15  ;;  %v636_v26 = vmax.f32 %v534_v10, 0.0  ;;  %v598_v41 = vadd.f32 %v1736_v25, %v597_v38  ;;  %v1487_v42 = vpop.f32.mrb[10].mxu1 }
  0xfa   : > { %v639_v23 = vmax.f32 %v545_v14, 0.0  ;;  %v654_v45 = vmax.f32 %v606_v37, 0.0  ;;  %v609_v46 = vadd.f32 %v1487_v42, %v1736_v25  ;;  %v600_v47 = vpop.f32.mrb[11].mxu1 }
  0xfb   : > { %v637_v27 = vmax.f32 %v537_v19, 0.0  ;;  %v652_v49 = vmax.f32 %v598_v41, 0.0  ;;  %v601_v50 = vadd.f32 %v1736_v25, %v600_v47 }
  0xfc   : > { %v665_v29 = vpack.c.bf16 %v639_v23, %v638_v22  ;;  %v655_v53 = vmax.f32 %v609_v46, 0.0 }
  0xfd   : > { %v664_v31 = vpack.c.bf16 %v637_v27, %v636_v26  ;;  %v1474_v32 = vpop.f32.mrb[12].mxu0  ;;  %v653_v56 = vmax.f32 %v601_v50, 0.0 }
  0xfe   : > { %v558_v35 = vadd.f32 %v1474_v32, %v1736_v25  ;;  %v549_v36 = vpop.f32.mrb[13].mxu0  ;;  %v673_v58 = vpack.c.bf16 %v655_v53, %v654_v45 }
  0xff   : > { %v550_v39 = vadd.f32 %v1736_v25, %v549_v36  ;;  %v1475_v40 = vpop.f32.mrb[14].mxu0  ;;  %1508 = vmatprep.mubr.msk.bf16.mxu1 %vm715_vm1, %v664_v31  ;;  %v672_v60 = vpack.c.bf16 %v653_v56, %v652_v49  ;;  %v1490_v61 = vpop.f32.mrb[12].mxu1 }
 0x100   : > { %v561_v43 = vadd.f32 %v1475_v40, %v1736_v25  ;;  %v552_v44 = vpop.f32.mrb[15].mxu0  ;;  %1509 = vmatmul.mubr.msk.bf16.gmra.mrb[24].mxu1 %vm715_vm1, %v665_v29  ;;  %v642_v51 = vmax.f32 %v558_v35, 0.0  ;;  %v622_v62 = vadd.f32 %v1490_v61, %v1736_v25  ;;  %v613_v63 = vpop.f32.mrb[13].mxu1 }
 0x101   : > { %v553_v48 = vadd.f32 %v1736_v25, %v552_v44  ;;  %v640_v54 = vmax.f32 %v550_v39, 0.0  ;;  %v614_v0 = vadd.f32 %v1736_v25, %v613_v63  ;;  %v1491_v2 = vpop.f32.mrb[14].mxu1 }
 0x102   : > { %v643_v52 = vmax.f32 %v561_v43, 0.0  ;;  %v658_v3 = vmax.f32 %v622_v62, 0.0  ;;  %v625_v5 = vadd.f32 %v1491_v2, %v1736_v25  ;;  %v616_v6 = vpop.f32.mrb[15].mxu1 }
 0x103   : > { %v641_v55 = vmax.f32 %v553_v48, 0.0  ;;  %v656_v7 = vmax.f32 %v614_v0, 0.0  ;;  %v617_v8 = vadd.f32 %v1736_v25, %v616_v6  ;;  %v1609_v25 = vld [vmem:[%s1963_s5 + $0x18] sm:$0xff]  }
 0x104   : > { %v667_v57 = vpack.c.bf16 %v643_v52, %v642_v51  ;;  %v659_v9 = vmax.f32 %v625_v5, 0.0  ;;  %1538 = vmatprep.subr.bf16.mxu0 %v1609_v25 }
 0x105   : > { %v666_v59 = vpack.c.bf16 %v641_v55, %v640_v54  ;;  %v657_v10 = vmax.f32 %v617_v8, 0.0  ;;  %1539 = vmatpush3.bf16.msra.mxu0 %v1609_v25 }
 0x106   : > { %v675_v11 = vpack.c.bf16 %v659_v9, %v658_v3 }
 0x107   : > { %1512 = vmatprep.mubr.msk.bf16.mxu1 %vm715_vm1, %v666_v59  ;;  %v674_v12 = vpack.c.bf16 %v657_v10, %v656_v7 }
 0x108   : > { %1513 = vmatmul.mubr.msk.bf16.gmra.mrb[28].mxu1 %vm715_vm1, %v667_v57 }
 0x109   : > { %1516 = vmatprep.mubr.msk.bf16.mxu1 %vm715_vm1, %v1754_v4 }
 0x110   : > { %1517 = vmatmul.mubr.msk.bf16.gmra.mrb[32].mxu1 %vm715_vm1, %v1752_v1  ;;  %v1798_v1 = vld [vmem:[%s1962_s4] ss:$0 sm:$0xff] }
 0x111   : > { %1520 = vmatprep.mubr.msk.bf16.mxu1 %vm715_vm1, %v670_v33 }
 0x118   : > { %1521 = vmatmul.mubr.msk.bf16.gmra.mrb[36].mxu1 %vm715_vm1, %v671_v30 }
 0x119   : > { %1524 = vmatprep.mubr.msk.bf16.mxu1 %vm715_vm1, %v672_v60 }
 0x120   : > { %1525 = vmatmul.mubr.msk.bf16.gmra.mrb[40].mxu1 %vm715_vm1, %v673_v58 }
 0x121   : > { %1528 = vmatprep.mubr.msk.bf16.mxu1 %vm715_vm1, %v674_v12 }
 0x128   : > { %1529 = vmatmul.mubr.msk.bf16.gmra.mrb[44].mxu1 %vm715_vm1, %v675_v11 }
 0x1c3   : > { %v1502_v4 = vpop.f32.mrb[16].mxu1 }
 0x1c4   : > { %v807_v13 = vadd.f32 %v1502_v4, %v1798_v1  ;;  %v798_v14 = vpop.f32.mrb[17].mxu1 }
 0x1c5   : > { %v799_v15 = vadd.f32 %v1798_v1, %v798_v14  ;;  %v1503_v16 = vpop.f32.mrb[18].mxu1 }
 0x1c6   : > { %v810_v17 = vadd.f32 %v1503_v16, %v1798_v1  ;;  %v801_v18 = vpop.f32.mrb[19].mxu1  ;;  %v927_v20 = vmax.f32 %v807_v13, 0.0 }
 0x1c7   : > { %v802_v19 = vadd.f32 %v1798_v1, %v801_v18  ;;  %v925_v22 = vmax.f32 %v799_v15, 0.0 }
 0x1c8   : > { %v928_v21 = vmax.f32 %v810_v17, 0.0 }
 0x1c9   : > { %v926_v23 = vmax.f32 %v802_v19, 0.0 }
 0x1ca   : > { %v958_v24 = vpack.c.bf16 %v928_v21, %v927_v20 }
 0x1cb   : > { %v957_v26 = vpack.c.bf16 %v926_v23, %v925_v22  ;;  %v1506_v27 = vpop.f32.mrb[20].mxu1 }
 0x1cc   : > { %v823_v28 = vadd.f32 %v1506_v27, %v1798_v1  ;;  %v814_v29 = vpop.f32.mrb[21].mxu1 }
 0x1cd   : > { %v815_v30 = vadd.f32 %v1798_v1, %v814_v29  ;;  %v1507_v31 = vpop.f32.mrb[22].mxu1  ;;  %1540 = vmatprep.mubr.msk.bf16.mxu0 %vm715_vm1, %v957_v26 }
 0x1ce   : > { %v826_v32 = vadd.f32 %v1507_v31, %v1798_v1  ;;  %v817_v33 = vpop.f32.mrb[23].mxu1  ;;  %1541 = vmatmul.mubr.msk.bf16.vlgmr.msra.gmra.mrb[16].mxu0 %vm715_vm1, %v958_v24  ;;  %v931_v35 = vmax.f32 %v823_v28, 0.0 }
 0x1cf   : > { %v818_v34 = vadd.f32 %v1798_v1, %v817_v33  ;;  %v929_v37 = vmax.f32 %v815_v30, 0.0 }
 0x1d0   : > { %v932_v36 = vmax.f32 %v826_v32, 0.0 }
 0x1d1   : > { %v930_v38 = vmax.f32 %v818_v34, 0.0 }
 0x1d2   : > { %v960_v39 = vpack.c.bf16 %v932_v36, %v931_v35 }
 0x1d3   : > { %v959_v40 = vpack.c.bf16 %v930_v38, %v929_v37  ;;  %v1510_v41 = vpop.f32.mrb[24].mxu1 }
 0x1d4   : > { %v839_v42 = vadd.f32 %v1510_v41, %v1798_v1  ;;  %v830_v43 = vpop.f32.mrb[25].mxu1 }
 0x1d5   : > { %v831_v44 = vadd.f32 %v1798_v1, %v830_v43  ;;  %v1511_v45 = vpop.f32.mrb[26].mxu1  ;;  %1544 = vmatprep.mubr.msk.bf16.mxu0 %vm715_vm1, %v959_v40 }
 0x1d6   : > { %v842_v46 = vadd.f32 %v1511_v45, %v1798_v1  ;;  %v833_v47 = vpop.f32.mrb[27].mxu1  ;;  %1545 = vmatmul.mubr.msk.bf16.gmra.mrb[20].mxu0 %vm715_vm1, %v960_v39  ;;  %v935_v49 = vmax.f32 %v839_v42, 0.0 }
 0x1d7   : > { %v834_v48 = vadd.f32 %v1798_v1, %v833_v47  ;;  %v933_v51 = vmax.f32 %v831_v44, 0.0 }
 0x1d8   : > { %v936_v50 = vmax.f32 %v842_v46, 0.0 }
 0x1d9   : > { %v934_v52 = vmax.f32 %v834_v48, 0.0 }
 0x1da   : > { %v962_v53 = vpack.c.bf16 %v936_v50, %v935_v49 }
 0x1db   : > { %v961_v54 = vpack.c.bf16 %v934_v52, %v933_v51  ;;  %v1514_v55 = vpop.f32.mrb[28].mxu1 }
 0x1dc   : > { %v855_v56 = vadd.f32 %v1514_v55, %v1798_v1  ;;  %v846_v57 = vpop.f32.mrb[29].mxu1 }
 0x1dd   : > { %v847_v58 = vadd.f32 %v1798_v1, %v846_v57  ;;  %v1515_v59 = vpop.f32.mrb[30].mxu1  ;;  %1548 = vmatprep.mubr.msk.bf16.mxu0 %vm715_vm1, %v961_v54 }
 0x1de   : > { %v858_v60 = vadd.f32 %v1515_v59, %v1798_v1  ;;  %v849_v61 = vpop.f32.mrb[31].mxu1  ;;  %1549 = vmatmul.mubr.msk.bf16.gmra.mrb[24].mxu0 %vm715_vm1, %v962_v53  ;;  %v939_v63 = vmax.f32 %v855_v56, 0.0 }
 0x1df   : > { %v850_v62 = vadd.f32 %v1798_v1, %v849_v61  ;;  %v937_v2 = vmax.f32 %v847_v58, 0.0 }
 0x1e0   : > { %v940_v0 = vmax.f32 %v858_v60, 0.0 }
 0x1e1   : > { %v938_v3 = vmax.f32 %v850_v62, 0.0  ;;  %v1852_v62 = vld [vmem:[%s1964_s6] ss:$0 sm:$0xff] }
 0x1e2   : > { %v964_v5 = vpack.c.bf16 %v940_v0, %v939_v63 }
 0x1e3   : > { %v963_v6 = vpack.c.bf16 %v938_v3, %v937_v2  ;;  %v1518_v7 = vpop.f32.mrb[32].mxu1 }
 0x1e4   : > { %v871_v8 = vadd.f32 %v1518_v7, %v1798_v1  ;;  %v862_v9 = vpop.f32.mrb[33].mxu1 }
 0x1e5   : > { %v863_v10 = vadd.f32 %v1798_v1, %v862_v9  ;;  %v1519_v11 = vpop.f32.mrb[34].mxu1  ;;  %1552 = vmatprep.mubr.msk.bf16.mxu0 %vm715_vm1, %v963_v6 }
 0x1e6   : > { %v874_v12 = vadd.f32 %v1519_v11, %v1798_v1  ;;  %v865_v25 = vpop.f32.mrb[35].mxu1  ;;  %1553 = vmatmul.mubr.msk.bf16.gmra.mrb[28].mxu0 %vm715_vm1, %v964_v5  ;;  %v943_v13 = vmax.f32 %v871_v8, 0.0 }
 0x1e7   : > { %v866_v4 = vadd.f32 %v1798_v1, %v865_v25  ;;  %v941_v15 = vmax.f32 %v863_v10, 0.0 }
 0x1e8   : > { %v944_v14 = vmax.f32 %v874_v12, 0.0 }
 0x1e9   : > { %v942_v16 = vmax.f32 %v866_v4, 0.0 }
 0x1ea   : > { %v966_v17 = vpack.c.bf16 %v944_v14, %v943_v13 }
 0x1eb   : > { %v965_v18 = vpack.c.bf16 %v942_v16, %v941_v15  ;;  %v1522_v19 = vpop.f32.mrb[36].mxu1 }
 0x1ec   : > { %v887_v20 = vadd.f32 %v1522_v19, %v1798_v1  ;;  %v878_v21 = vpop.f32.mrb[37].mxu1 }
 0x1ed   : > { %v879_v22 = vadd.f32 %v1798_v1, %v878_v21  ;;  %v1523_v23 = vpop.f32.mrb[38].mxu1  ;;  %1556 = vmatprep.mubr.msk.bf16.mxu0 %vm715_vm1, %v965_v18 }
 0x1ee   : > { %v890_v24 = vadd.f32 %v1523_v23, %v1798_v1  ;;  %v881_v26 = vpop.f32.mrb[39].mxu1  ;;  %1557 = vmatmul.mubr.msk.bf16.gmra.mrb[32].mxu0 %vm715_vm1, %v966_v17  ;;  %v947_v28 = vmax.f32 %v887_v20, 0.0 }
 0x1ef   : > { %v882_v27 = vadd.f32 %v1798_v1, %v881_v26  ;;  %v945_v30 = vmax.f32 %v879_v22, 0.0 }
 0x1f0   : > { %v948_v29 = vmax.f32 %v890_v24, 0.0 }
 0x1f1   : > { %v946_v31 = vmax.f32 %v882_v27, 0.0 }
 0x1f2   : > { %v968_v32 = vpack.c.bf16 %v948_v29, %v947_v28 }
 0x1f3   : > { %v967_v33 = vpack.c.bf16 %v946_v31, %v945_v30  ;;  %v1526_v34 = vpop.f32.mrb[40].mxu1 }
 0x1f4   : > { %v903_v35 = vadd.f32 %v1526_v34, %v1798_v1  ;;  %v894_v36 = vpop.f32.mrb[41].mxu1 }
 0x1f5   : > { %v895_v37 = vadd.f32 %v1798_v1, %v894_v36  ;;  %v1527_v38 = vpop.f32.mrb[42].mxu1  ;;  %1560 = vmatprep.mubr.msk.bf16.mxu0 %vm715_vm1, %v967_v33 }
 0x1f6   : > { %v906_v39 = vadd.f32 %v1527_v38, %v1798_v1  ;;  %v897_v40 = vpop.f32.mrb[43].mxu1  ;;  %1561 = vmatmul.mubr.msk.bf16.gmra.mrb[36].mxu0 %vm715_vm1, %v968_v32  ;;  %v951_v42 = vmax.f32 %v903_v35, 0.0 }
 0x1f7   : > { %v898_v41 = vadd.f32 %v1798_v1, %v897_v40  ;;  %v949_v44 = vmax.f32 %v895_v37, 0.0 }
 0x1f8   : > { %v952_v43 = vmax.f32 %v906_v39, 0.0 }
 0x1f9   : > { %v950_v45 = vmax.f32 %v898_v41, 0.0 }
 0x1fa   : > { %v970_v46 = vpack.c.bf16 %v952_v43, %v951_v42 }
 0x1fb   : > { %v969_v47 = vpack.c.bf16 %v950_v45, %v949_v44  ;;  %v1530_v48 = vpop.f32.mrb[44].mxu1 }
 0x1fc   : > { %v919_v49 = vadd.f32 %v1530_v48, %v1798_v1  ;;  %v910_v50 = vpop.f32.mrb[45].mxu1 }
 0x1fd   : > { %v911_v51 = vadd.f32 %v1798_v1, %v910_v50  ;;  %v1531_v52 = vpop.f32.mrb[46].mxu1  ;;  %1564 = vmatprep.mubr.msk.bf16.mxu0 %vm715_vm1, %v969_v47 }
 0x1fe   : > { %v922_v53 = vadd.f32 %v1531_v52, %v1798_v1  ;;  %v913_v54 = vpop.f32.mrb[47].mxu1  ;;  %1565 = vmatmul.mubr.msk.bf16.gmra.mrb[40].mxu0 %vm715_vm1, %v970_v46  ;;  %v955_v56 = vmax.f32 %v919_v49, 0.0 }
 0x1ff   : > { %v914_v55 = vadd.f32 %v1798_v1, %v913_v54  ;;  %v953_v58 = vmax.f32 %v911_v51, 0.0 }
 0x200   : > { %v956_v57 = vmax.f32 %v922_v53, 0.0 }
 0x201   : > { %v954_v59 = vmax.f32 %v914_v55, 0.0 }
 0x202   : > { %v972_v60 = vpack.c.bf16 %v956_v57, %v955_v56 }
 0x203   : > { %v971_v61 = vpack.c.bf16 %v954_v59, %v953_v58 }
 0x205   : > { %1568 = vmatprep.mubr.msk.bf16.mxu0 %vm715_vm1, %v971_v61 }
 0x206   : > { %1569 = vmatmul.mubr.msk.bf16.gmra.mrb[44].mxu0 %vm715_vm1, %v972_v60 }
 0x2a1   : > { %v1542_v1 = vpop.f32.mrb[16].mxu0 }
 0x2a2   : > { %v1103_v63 = vadd.f32 %v1542_v1, %v1852_v62  ;;  %v1094_v0 = vpop.f32.mrb[17].mxu0 }
 0x2a3   : > { %v1095_v2 = vadd.f32 %v1852_v62, %v1094_v0  ;;  %v1543_v3 = vpop.f32.mrb[18].mxu0 }
 0x2a4   : > { %1224 = vst.msk [vmem:[%s1857_s16 + $0x10] sm:$0xff] %vm1221_vm2, %v1103_v63  ;;  %v1106_v5 = vadd.f32 %v1543_v3, %v1852_v62  ;;  %v1097_v6 = vpop.f32.mrb[19].mxu0 }
 0x2a5   : > { %1222 = vst.msk [vmem:[%s1857_s16] sm:$0xff] %vm1221_vm2, %v1095_v2  ;;  %v1098_v7 = vadd.f32 %v1852_v62, %v1097_v6 }
 0x2a6   : > { %1225 = vst.msk [vmem:[%s1857_s16 + $0x18] sm:$0xff] %vm1221_vm2, %v1106_v5 }
 0x2a7   : > { %1223 = vst.msk [vmem:[%s1857_s16 + $0x8] sm:$0xff] %vm1221_vm2, %v1098_v7 }
 0x2a9   : > { %v1546_v8 = vpop.f32.mrb[20].mxu0 }
 0x2aa   : > { %v1119_v9 = vadd.f32 %v1546_v8, %v1852_v62  ;;  %v1110_v10 = vpop.f32.mrb[21].mxu0 }
 0x2ab   : > { %v1111_v11 = vadd.f32 %v1852_v62, %v1110_v10  ;;  %v1547_v12 = vpop.f32.mrb[22].mxu0 }
 0x2ac   : > { %1228 = vst.msk [vmem:[%s1857_s16 + $0x30] sm:$0xff] %vm1221_vm2, %v1119_v9  ;;  %v1122_v25 = vadd.f32 %v1547_v12, %v1852_v62  ;;  %v1113_v4 = vpop.f32.mrb[23].mxu0 }
 0x2ad   : > { %1226 = vst.msk [vmem:[%s1857_s16 + $0x20] sm:$0xff] %vm1221_vm2, %v1111_v11  ;;  %v1114_v13 = vadd.f32 %v1852_v62, %v1113_v4 }
 0x2ae   : > { %1229 = vst.msk [vmem:[%s1857_s16 + $0x38] sm:$0xff] %vm1221_vm2, %v1122_v25 }
 0x2af   : > { %1227 = vst.msk [vmem:[%s1857_s16 + $0x28] sm:$0xff] %vm1221_vm2, %v1114_v13 }
 0x2b1   : > { %v1550_v14 = vpop.f32.mrb[24].mxu0 }
 0x2b2   : > { %v1135_v15 = vadd.f32 %v1550_v14, %v1852_v62  ;;  %v1126_v16 = vpop.f32.mrb[25].mxu0 }
 0x2b3   : > { %v1127_v17 = vadd.f32 %v1852_v62, %v1126_v16  ;;  %v1551_v18 = vpop.f32.mrb[26].mxu0 }
 0x2b4   : > { %1232 = vst.msk [vmem:[%s1857_s16 + $0x50] sm:$0xff] %vm1221_vm2, %v1135_v15  ;;  %v1138_v19 = vadd.f32 %v1551_v18, %v1852_v62  ;;  %v1129_v20 = vpop.f32.mrb[27].mxu0 }
 0x2b5   : > { %1230 = vst.msk [vmem:[%s1857_s16 + $0x40] sm:$0xff] %vm1221_vm2, %v1127_v17  ;;  %v1130_v21 = vadd.f32 %v1852_v62, %v1129_v20 }
 0x2b6   : > { %1233 = vst.msk [vmem:[%s1857_s16 + $0x58] sm:$0xff] %vm1221_vm2, %v1138_v19 }
 0x2b7   : > { %1231 = vst.msk [vmem:[%s1857_s16 + $0x48] sm:$0xff] %vm1221_vm2, %v1130_v21 }
 0x2b9   : > { %v1554_v22 = vpop.f32.mrb[28].mxu0 }
 0x2ba   : > { %v1151_v23 = vadd.f32 %v1554_v22, %v1852_v62  ;;  %v1142_v24 = vpop.f32.mrb[29].mxu0 }
 0x2bb   : > { %v1143_v26 = vadd.f32 %v1852_v62, %v1142_v24  ;;  %v1555_v27 = vpop.f32.mrb[30].mxu0 }
 0x2bc   : > { %1236 = vst.msk [vmem:[%s1857_s16 + $0x70] sm:$0xff] %vm1221_vm2, %v1151_v23  ;;  %v1154_v28 = vadd.f32 %v1555_v27, %v1852_v62  ;;  %v1145_v29 = vpop.f32.mrb[31].mxu0 }
 0x2bd   : > { %1234 = vst.msk [vmem:[%s1857_s16 + $0x60] sm:$0xff] %vm1221_vm2, %v1143_v26  ;;  %v1146_v30 = vadd.f32 %v1852_v62, %v1145_v29 }
 0x2be   : > { %1237 = vst.msk [vmem:[%s1857_s16 + $0x78] sm:$0xff] %vm1221_vm2, %v1154_v28 }
 0x2bf   : > { %1235 = vst.msk [vmem:[%s1857_s16 + $0x68] sm:$0xff] %vm1221_vm2, %v1146_v30 }
 0x2c1   : > { %v1558_v31 = vpop.f32.mrb[32].mxu0 }
 0x2c2   : > { %v1167_v32 = vadd.f32 %v1558_v31, %v1852_v62  ;;  %v1158_v33 = vpop.f32.mrb[33].mxu0 }
 0x2c3   : > { %v1159_v34 = vadd.f32 %v1852_v62, %v1158_v33  ;;  %v1559_v35 = vpop.f32.mrb[34].mxu0 }
 0x2c4   : > { %1240 = vst.msk [vmem:[%s1857_s16 + $0x90] sm:$0xff] %vm1221_vm2, %v1167_v32  ;;  %v1170_v36 = vadd.f32 %v1559_v35, %v1852_v62  ;;  %v1161_v37 = vpop.f32.mrb[35].mxu0 }
 0x2c5   : > { %1238 = vst.msk [vmem:[%s1857_s16 + $0x80] sm:$0xff] %vm1221_vm2, %v1159_v34  ;;  %v1162_v38 = vadd.f32 %v1852_v62, %v1161_v37 }
 0x2c6   : > { %1241 = vst.msk [vmem:[%s1857_s16 + $0x98] sm:$0xff] %vm1221_vm2, %v1170_v36 }
 0x2c7   : > { %1239 = vst.msk [vmem:[%s1857_s16 + $0x88] sm:$0xff] %vm1221_vm2, %v1162_v38 }
 0x2c9   : > { %v1562_v39 = vpop.f32.mrb[36].mxu0 }
 0x2ca   : > { %v1183_v40 = vadd.f32 %v1562_v39, %v1852_v62  ;;  %v1174_v41 = vpop.f32.mrb[37].mxu0 }
 0x2cb   : > { %v1175_v42 = vadd.f32 %v1852_v62, %v1174_v41  ;;  %v1563_v43 = vpop.f32.mrb[38].mxu0 }
 0x2cc   : > { %1244 = vst.msk [vmem:[%s1857_s16 + $0xb0] sm:$0xff] %vm1221_vm2, %v1183_v40  ;;  %v1186_v44 = vadd.f32 %v1563_v43, %v1852_v62  ;;  %v1177_v45 = vpop.f32.mrb[39].mxu0 }
 0x2cd   : > { %1242 = vst.msk [vmem:[%s1857_s16 + $0xa0] sm:$0xff] %vm1221_vm2, %v1175_v42  ;;  %v1178_v46 = vadd.f32 %v1852_v62, %v1177_v45 }
 0x2ce   : > { %1245 = vst.msk [vmem:[%s1857_s16 + $0xb8] sm:$0xff] %vm1221_vm2, %v1186_v44 }
 0x2cf   : > { %1243 = vst.msk [vmem:[%s1857_s16 + $0xa8] sm:$0xff] %vm1221_vm2, %v1178_v46 }
 0x2d1   : > { %v1566_v47 = vpop.f32.mrb[40].mxu0 }
 0x2d2   : > { %v1199_v48 = vadd.f32 %v1566_v47, %v1852_v62  ;;  %v1190_v49 = vpop.f32.mrb[41].mxu0 }
 0x2d3   : > { %v1191_v50 = vadd.f32 %v1852_v62, %v1190_v49  ;;  %v1567_v51 = vpop.f32.mrb[42].mxu0 }
 0x2d4   : > { %1248 = vst.msk [vmem:[%s1857_s16 + $0xd0] sm:$0xff] %vm1221_vm2, %v1199_v48  ;;  %v1202_v52 = vadd.f32 %v1567_v51, %v1852_v62  ;;  %v1193_v53 = vpop.f32.mrb[43].mxu0 }
 0x2d5   : > { %1246 = vst.msk [vmem:[%s1857_s16 + $0xc0] sm:$0xff] %vm1221_vm2, %v1191_v50  ;;  %v1194_v54 = vadd.f32 %v1852_v62, %v1193_v53 }
 0x2d6   : > { %1249 = vst.msk [vmem:[%s1857_s16 + $0xd8] sm:$0xff] %vm1221_vm2, %v1202_v52 }
 0x2d7   : > { %1247 = vst.msk [vmem:[%s1857_s16 + $0xc8] sm:$0xff] %vm1221_vm2, %v1194_v54 }
 0x2d9   : > { %v1570_v55 = vpop.f32.mrb[44].mxu0 }
 0x2da   : > { %v1215_v56 = vadd.f32 %v1570_v55, %v1852_v62  ;;  %v1206_v57 = vpop.f32.mrb[45].mxu0 }
 0x2db   : > { %v1207_v58 = vadd.f32 %v1852_v62, %v1206_v57  ;;  %v1571_v59 = vpop.f32.mrb[46].mxu0 }
 0x2dc   : > { %1252 = vst.msk [vmem:[%s1857_s16 + $0xf0] sm:$0xff] %vm1221_vm2, %v1215_v56  ;;  %v1218_v60 = vadd.f32 %v1571_v59, %v1852_v62  ;;  %v1209_v61 = vpop.f32.mrb[47].mxu0 }
 0x2dd   : > { %1250 = vst.msk [vmem:[%s1857_s16 + $0xe0] sm:$0xff] %vm1221_vm2, %v1207_v58  ;;  %v1210_v1 = vadd.f32 %v1852_v62, %v1209_v61 }
 0x2de   : > { %1253 = vst.msk [vmem:[%s1857_s16 + $0xf8] sm:$0xff] %vm1221_vm2, %v1218_v60 }
 0x2df   : > { %1251 = vst.msk [vmem:[%s1857_s16 + $0xe8] sm:$0xff] %vm1221_vm2, %v1210_v1 }
 0x2e0 PF: > { %s17_s24 = sadd.s32 1, %s1616_s24  }
 0x2e1   : > { %p14_p4 = scmp.ge.s32.totalorder %s17_s24, 4  }
 0x2e3   :  { %16 = sbr.rel (!%p14_p4) target bundleno = 1 (0x1), region = 78 }

</bundles_post_ra>
